<compile_context>
chip_gen: v7x
topology: tpu7x:2x2x1
jax: 0.10.0
libtpu: 0.0.40
codegen_flags: <defaults>
</compile_context>

<pallas_src>
import math

import jax
import jax.numpy as jnp
from jax.experimental import pallas as pl
from jax.experimental.pallas import tpu as pltpu


def _copy_kernel(x_ref, o_ref):
    # (tr, tc) tile resident in VMEM.  Pure copy — this IS Flatten's "compute".
    o_ref[...] = x_ref[...]


# sublane packing per itemsize (f32 -> 8, bf16/f16 -> 16, int8/fp8 -> 32)
_SUBLANE_BY_ITEMSIZE = {4: 8, 2: 16, 1: 32}
_LANE = 128
_MIB = 1024 * 1024


def _vmem_budget():
    """Generation-aware (per-buffer tile budget, scoped vmem_limit_bytes)."""
    try:
        phys = int(getattr(pltpu.get_tpu_info(), "vmem_capacity_bytes", 0))
    except Exception:
        phys = 0
    if phys <= 0:
        phys = 64 * _MIB  # conservative: assume v7x-class 64 MiB physical
    # Leave >=16 MiB of physical VMEM for Mosaic internal scratch.
    vmem_limit = max(16 * _MIB, min(phys - 16 * _MIB, 64 * _MIB))
    # 2 operands x 2 pipeline buffers = 4 live tiles; keep ~2x headroom.
    tile_budget = vmem_limit // 8  # v7x -> 6 MiB, v5e/v6e -> 8 MiB per buffer
    return tile_budget, vmem_limit


def _copy_lane_dense(x2d, itemsize, tile_budget, vmem_limit):
    """Identity copy of a (g, 128) slab, pipelined along rows."""
    g, lane = x2d.shape
    sublane = _SUBLANE_BY_ITEMSIZE.get(itemsize, 8)
    total_bytes = g * lane * itemsize
    out_shape = jax.ShapeDtypeStruct((g, lane), x2d.dtype)
    cost = pl.CostEstimate(flops=0, transcendentals=0, bytes_accessed=2 * total_bytes)

    if total_bytes <= tile_budget:
        # Whole slab is one block: one DMA in, one DMA out, no grid bookkeeping.
        return pl.pallas_call(
            _copy_kernel,
            out_shape=out_shape,
            input_output_aliases={0: 0},
            compiler_params=pltpu.CompilerParams(vmem_limit_bytes=vmem_limit),
            cost_estimate=cost,
        )(x2d)

    # Largest sublane-aligned row tile under budget; grid has >=2 blocks here,
    # so the "parallel" axis gives both v7x TensorCores work.
    tr = max(sublane, (tile_budget // (lane * itemsize)) // sublane * sublane)
    grid = (pl.cdiv(g, tr),)
    return pl.pallas_call(
        _copy_kernel,
        out_shape=out_shape,
        grid=grid,
        in_specs=[pl.BlockSpec((tr, lane), lambda i: (i, 0))],
        out_specs=pl.BlockSpec((tr, lane), lambda i: (i, 0)),
        input_output_aliases={0: 0},
        compiler_params=pltpu.CompilerParams(
            dimension_semantics=("parallel",),
            vmem_limit_bytes=vmem_limit,
        ),
        cost_estimate=cost,
    )(x2d)


def _copy_row_tiled(x2d, itemsize, tile_budget, vmem_limit):
    """Fallback copy when the element count is not 128-aligned: tile rows only;
    the block's last dim equals the full array extent (legal block shape)."""
    n, feat = x2d.shape
    total_bytes = n * feat * itemsize
    out_shape = jax.ShapeDtypeStruct((n, feat), x2d.dtype)
    cost = pl.CostEstimate(flops=0, transcendentals=0, bytes_accessed=2 * total_bytes)
    row_bytes = max(feat * itemsize, 1)
    tn = max(8, (tile_budget // row_bytes) // 8 * 8)

    if total_bytes <= tile_budget or tn >= n:
        # TODO(synk): if a single 8-row block still exceeds VMEM (enormous
        # non-128-aligned rows), pad `feat` to a multiple of 128 in the wrapper.
        return pl.pallas_call(
            _copy_kernel,
            out_shape=out_shape,
            input_output_aliases={0: 0},
            compiler_params=pltpu.CompilerParams(vmem_limit_bytes=vmem_limit),
            cost_estimate=cost,
        )(x2d)

    grid = (pl.cdiv(n, tn),)
    return pl.pallas_call(
        _copy_kernel,
        out_shape=out_shape,
        grid=grid,
        in_specs=[pl.BlockSpec((tn, feat), lambda i: (i, 0))],
        out_specs=pl.BlockSpec((tn, feat), lambda i: (i, 0)),
        input_output_aliases={0: 0},
        compiler_params=pltpu.CompilerParams(
            dimension_semantics=("parallel",),
            vmem_limit_bytes=vmem_limit,
        ),
        cost_estimate=cost,
    )(x2d)


def flatten_pallas(x, max_tile_bytes=None):
    """Equivalent of torch `input.view(input.size(0), -1)` for any rank >= 1.

    NOTE: the true production path is `jnp.reshape(x, (x.shape[0], -1))`
    (metadata-only, zero bytes moved); the explicit Pallas copy is the
    required deliverable and is kept at the HBM roofline.
    """
    n = x.shape[0]
    feat = math.prod(x.shape[1:])
    if n * feat == 0:
        return jnp.reshape(x, (n, feat))

    itemsize = jnp.dtype(x.dtype).itemsize
    tile_budget, vmem_limit = _vmem_budget()
    if max_tile_bytes is not None:
        tile_budget = int(max_tile_bytes)

    total = n * feat
    if total % _LANE == 0:
        # Copy tiling is decoupled from the logical (n, feat) shape: view the
        # contiguous slab as (total/128, 128).  Lane-dense, fully sublane-
        # packed, and the surrounding reshapes are metadata-only.
        g = total // _LANE
        y = _copy_lane_dense(jnp.reshape(x, (g, _LANE)), itemsize,
                             tile_budget, vmem_limit)
        return jnp.reshape(y, (n, feat))

    # Element count not 128-aligned anywhere: row-tiled pipelined fallback.
    return _copy_row_tiled(jnp.reshape(x, (n, feat)), itemsize,
                           tile_budget, vmem_limit)


if __name__ == "__main__":
    key0, key1, key2 = jax.random.split(jax.random.PRNGKey(0), 3)

    # Primary case: small NCHW conv-feature map.  total=8192 -> lane-dense
    # (64, 128) view, single block, all sublanes full despite batch=2.
    x = jax.random.normal(key0, (2, 4, 16, 16), dtype=jnp.float32)
    y = jax.block_until_ready(flatten_pallas(x))
    y_ref = jnp.reshape(x, (x.shape[0], -1))
    assert y.shape == (2, 4 * 16 * 16), y.shape
    assert y.dtype == x.dtype
    assert bool(jnp.all(y == y_ref))

    # Multi-block lane-dense pipelined path (tile budget overridden so the
    # grid + aliasing + cost-estimate path is exercised at a small shape).
    x2 = jax.random.normal(key1, (4, 8, 32, 32), dtype=jnp.float32)
    y2 = jax.block_until_ready(flatten_pallas(x2, max_tile_bytes=32 * 1024))
    assert y2.shape == (4, 8 * 32 * 32), y2.shape
    assert bool(jnp.all(y2 == jnp.reshape(x2, (4, -1))))

    # Non-128-aligned feature size -> row-tiled fallback (grid of (tn, feat)
    # blocks, full-extent last dim), never a single unbounded VMEM block.
    x3 = jax.random.normal(key2, (16, 5, 7), dtype=jnp.float32)
    y3 = jax.block_until_ready(flatten_pallas(x3, max_tile_bytes=2 * 1024))
    assert y3.shape == (16, 35), y3.shape
    assert bool(jnp.all(y3 == jnp.reshape(x3, (16, -1))))

    print("KERNEL_OK")
</pallas_src>

<mosaic_0001>
module attributes {stable_mosaic.version = 11 : i64} {
  func.func @_copy_kernel(%arg0: memref<16x128xf32, #tpu.memory_space<vmem>>, %arg1: memref<16x128xf32, #tpu.memory_space<vmem>>) attributes {dimension_semantics = [], scalar_prefetch = 0 : i64, scratch_operands = 0 : i64, tpu.core_type = #tpu.core_type<tc>} {
    %c0 = arith.constant 0 : index
    %c0_0 = arith.constant 0 : index
    %0 = vector.load %arg0[%c0, %c0_0] : memref<16x128xf32, #tpu.memory_space<vmem>>, vector<16x128xf32>
    %c0_1 = arith.constant 0 : index
    %c0_2 = arith.constant 0 : index
    %1 = vector.load %arg1[%c0_1, %c0_2] : memref<16x128xf32, #tpu.memory_space<vmem>>, vector<16x128xf32>
    tpu.vector_store %arg1[%c0_1, %c0_2], %0 {strides = array<i32>} : memref<16x128xf32, #tpu.memory_space<vmem>>, vector<16x128xf32>,
    return
  }
}

</mosaic_0001>

<bundles_post_ra>
// kernel: tpu_custom_call.1
= control target key start
LH: loop header
LB: loop body
LE: loop exit
PB: predicated region body
PF: predicated region fallthrough
CT: control target
= control target key end

     0   :  { %6 = vsyncpa [#allocation3], 0  ;;  %s134_s0 = inlined_call_operand.hbm [shape: f32[16,128], index: 0, kind: input, shape index: {}, may-alias: {0,1}]   ;;  %s135_s1 = inlined_call_operand.hbm [shape: f32[16,128], index: 1, kind: output, shape index: {}, may-alias: {0,1}]  }
   0x1   :  { %7 = vsyncpa [#allocation4], 0  ;;  %s96_s6 = smov [#allocation2]   ;;  %s48_s10 = scalar_lea.hbm %s134_s0, 256 }
   0x2   :  { %s13_s7 = sshll.u32 %s96_s6, 4  ;;  %p49_p0 = scmp.ne.s32.totalorder %s134_s0, %s48_s10  ;;  %s14_s7 = int_to_ptr.vmem [resolvable:$true] %s13_s7 }
   0x3   :  { %p52_p1 = scmp.lt.u32.totalorder %s48_s10, %s134_s0 }
   0x5   :  { %p54_p2 = pnand %p52_p1, %p49_p0 }
   0x7   :  { %57 = shalt.err (!%p54_p2)
}
   0x8   :  { %s58_s15 = scalar_lea.vmem %s14_s7, 256  ;;  %p63_p4 = scmp.lt.s32.totalorder %s14_s7, %s14_s7 }
   0x9   :  { %p59_p3 = scmp.ne.s32.totalorder %s14_s7, %s58_s15  ;;  %p64_p5 = scmp.lt.s32.totalorder %s58_s15, %s58_s15 }
   0xb   :  { %p65_p6 = por %p64_p5, %p63_p4 }
   0xd   :  { %p66_p7 = pnand %p65_p6, %p59_p3 }
   0xf   :  { %69 = shalt.err (!%p66_p7)
}
  0x10   :  { %s97_s16 = smov 128   ;;  %s98_s17 = smov 8  }
  0x11   :  { %19 = dma.hbm_to_vmem [thread:$0]  %s134_s0, 256, %s14_s7, [#allocation3], %s97_s16, %s97_s16, %s98_s17  }
  0x12   :  { %92 = dma.done.wait [#allocation3], 256  }
  0x13   :  { %93 = vsyncadd [#allocation3], 4294967040  ;;  %s99_s20 = smov [#allocation5]   ;;  %v23_v0 = vld [vmem:[#allocation2] sm:$0xff]  ;;  %v24_v1 = vld [vmem:[#allocation2 + $0x8] sm:$0xff] }
  0x14   :  { %s32_s21 = sshll.u32 %s99_s20, 4  ;;  %25 = vst [vmem:[#allocation5] sm:$0xff] %v23_v0  ;;  %26 = vst [vmem:[#allocation5 + $0x8] sm:$0xff] %v24_v1  ;;  %s33_s21 = int_to_ptr.vmem [resolvable:$true] %s32_s21 }
  0x15   :  { %s70_s22 = scalar_lea.vmem %s33_s21, 256  ;;  %p75_p9 = scmp.lt.s32.totalorder %s33_s21, %s33_s21 }
  0x16   :  { %p71_p8 = scmp.ne.s32.totalorder %s33_s21, %s70_s22  ;;  %p76_p10 = scmp.lt.s32.totalorder %s70_s22, %s70_s22 }
  0x18   :  { %p77_p11 = por %p76_p10, %p75_p9 }
  0x1a   :  { %p78_p12 = pnand %p77_p11, %p71_p8 }
  0x1c   :  { %81 = shalt.err (!%p78_p12)
}
  0x1d   :  { %s82_s0 = scalar_lea.hbm %s135_s1, 256 }
  0x1e   :  { %p83_p13 = scmp.ne.s32.totalorder %s135_s1, %s82_s0  ;;  %p86_p0 = scmp.lt.u32.totalorder %s82_s0, %s135_s1 }
  0x20   :  { %p88_p1 = pnand %p86_p0, %p83_p13 }
  0x22   :  { %91 = shalt.err (!%p88_p1)
}
  0x23   :  { %38 = dma.vmem_to_hbm [thread:$0]  %s33_s21, 256, %s135_s1, [#allocation4], %s97_s16, %s97_s16, %s98_s17  }
  0x24   :  { %94 = dma.done.wait [#allocation4], 256  }
  0x25   :  { %95 = vsyncadd [#allocation4], 4294967040 }
  0x26   :  { %42 = vsyncpa [#allocation3], 1 }
  0x27   :  { %43 = vsyncpa [#allocation4], 1 }

</bundles_post_ra>
